<compile_context>
chip_gen: v6e
topology: v6e:2x2x1
jax: 0.10.0
libtpu: 0.0.40
codegen_flags: <defaults>
</compile_context>

<pallas_src>
import math

import jax
import jax.numpy as jnp
from jax.experimental import pallas as pl
from jax.experimental.pallas import tpu as pltpu


def _mul_kernel(x_ref, w_ref, o_ref):
    # One (BN, BF) x-tile times one (1, BF) or (BN, BF) weight tile.
    # (1, BF) broadcasts along sublanes; single VPU multiply, then cast.
    o_ref[...] = (x_ref[...] * w_ref[...]).astype(o_ref.dtype)


def _round_up(a: int, b: int) -> int:
    return ((a + b - 1) // b) * b


def custom_linear_forward(x: jax.Array, weight: jax.Array) -> jax.Array:
    """Pallas implementation of CustomLinear.forward: x.mul(weight)."""
    LANE = 128
    BF_CAP = 32768  # cap lane-width so the sublane-padded weight block stays small

    out_dtype = jnp.result_type(x.dtype, weight.dtype)
    itemsize_x = jnp.dtype(x.dtype).itemsize
    itemsize_o = jnp.dtype(out_dtype).itemsize
    itemsize_w = jnp.dtype(weight.dtype).itemsize

    # dtype-aware sublane packing: f32 -> 8, bf16 -> 16, int8/fp8 -> 32.
    SUB = 8 * max(1, 4 // itemsize_x)

    # ---- resolve broadcasting (torch aligns trailing dims) ----------------
    full_shape = jnp.broadcast_shapes(x.shape, weight.shape)
    if x.shape != full_shape:
        x = jnp.broadcast_to(x, full_shape)

    if len(full_shape) >= 2:
        N = full_shape[0]
        trailing = full_shape[1:]
    else:
        N = 1
        trailing = full_shape
    F = max(1, math.prod(trailing))

    w = weight
    # Squeeze leading size-1 dims (e.g. weight (1,C,H,W) for x (N,C,H,W)).
    while w.ndim > len(trailing) and w.shape[0] == 1:
        w = jnp.squeeze(w, axis=0)
    weight_per_batch = w.ndim > len(trailing)  # weight genuinely varies with batch

    x2 = x.reshape(N, F)
    if weight_per_batch:
        w2 = jnp.broadcast_to(w, full_shape).reshape(N, F)
    else:
        w2 = jnp.broadcast_to(w, trailing).reshape(1, F)

    # ---- per-generation block sizing --------------------------------------
    try:
        vmem_cap = int(pltpu.get_tpu_info().vmem_capacity_bytes)
    except Exception:
        vmem_cap = 64 * 1024 * 1024  # conservative (v7x-sized) fallback
    if vmem_cap >= 100 * 1024 * 1024:   # v5e / v6e: 128 MiB VMEM
        target_bytes = 16 * 1024 * 1024
    else:                               # v7x: 64 MiB VMEM
        target_bytes = 8 * 1024 * 1024

    elems_per_block = max(SUB * LANE, target_bytes // max(itemsize_x, itemsize_o))

    # Lane-dense BF (multiple of 128), capped; sublane-aligned BN.
    max_bf = max(LANE, ((elems_per_block // SUB) // LANE) * LANE)
    BF = min(_round_up(F, LANE), BF_CAP, max_bf)
    bn = max(1, elems_per_block // BF)
    BN = min(_round_up(N, SUB), max(SUB, (bn // SUB) * SUB))

    nf = pl.cdiv(F, BF)
    nb = pl.cdiv(N, BN)

    # v7x has 2 TensorCores: make sure there are >= 2 blocks to shard when possible.
    if nf * nb == 1:
        if N >= 2 * SUB:
            BN = _round_up(pl.cdiv(N, 2), SUB)
            nb = pl.cdiv(N, BN)
        elif F >= 2 * LANE:
            BF = _round_up(pl.cdiv(F, 2), LANE)
            nf = pl.cdiv(F, BF)

    # ---- VMEM budget from the actual double-buffered footprint ------------
    if weight_per_batch:
        w_block_bytes = BN * BF * itemsize_w
    else:
        w_block_bytes = 8 * BF * max(itemsize_w, 4)  # (1, BF) pads to 8 sublanes
    footprint = 2 * BN * BF * itemsize_x + 2 * BN * BF * itemsize_o + 2 * w_block_bytes
    vmem_limit = max(footprint + (4 << 20), 16 << 20)
    vmem_limit = int(min(vmem_limit, vmem_cap - (4 << 20)))

    # ---- specs -------------------------------------------------------------
    x_spec = pl.BlockSpec((BN, BF), lambda j, n: (n, j))     # varies with batch
    if weight_per_batch:
        w_spec = pl.BlockSpec((BN, BF), lambda j, n: (n, j))
    else:
        w_spec = pl.BlockSpec((1, BF), lambda j, n: (0, j))  # reused across batch steps
    o_spec = pl.BlockSpec((BN, BF), lambda j, n: (n, j))

    out2 = pl.pallas_call(
        _mul_kernel,
        out_shape=jax.ShapeDtypeStruct((N, F), out_dtype),
        grid=(nf, nb),  # feature outer, batch INNER -> weight block stays resident
        in_specs=[x_spec, w_spec],
        out_specs=o_spec,
        compiler_params=pltpu.CompilerParams(
            dimension_semantics=("parallel", "parallel"),
            vmem_limit_bytes=vmem_limit,
        ),
    )(x2, w2)

    return out2.reshape(full_shape)


if __name__ == "__main__":
    key = jax.random.PRNGKey(0)
    kx, kw, kx2, kw2 = jax.random.split(key, 4)

    # Small shapes consistent with the module: x is NCHW, weight broadcasts over batch.
    N, C, H, W = 2, 4, 16, 16
    x = jax.random.normal(kx, (N, C, H, W), dtype=jnp.float32)
    weight = jax.random.normal(kw, (C, H, W), dtype=jnp.float32)

    out = custom_linear_forward(x, weight)
    out = jax.block_until_ready(out)
    ref = x * weight
    assert out.shape == ref.shape and out.dtype == ref.dtype
    assert jnp.allclose(out, ref, atol=1e-6, rtol=1e-6)

    # Ragged (non-block-aligned) shape + leading size-1 weight dim, exercising
    # the no-pad boundary-masked path and the broadcast fix.
    xr = jax.random.normal(kx2, (2, 3, 10, 20), dtype=jnp.float32)
    wr = jax.random.normal(kw2, (1, 3, 10, 20), dtype=jnp.float32)
    outr = jax.block_until_ready(custom_linear_forward(xr, wr))
    refr = xr * wr
    assert outr.shape == refr.shape and outr.dtype == refr.dtype
    assert jnp.allclose(outr, refr, atol=1e-6, rtol=1e-6)

    print("KERNEL_OK")
</pallas_src>

<mosaic_0001>
module attributes {stable_mosaic.version = 11 : i64} {
  func.func @_mul_kernel(%arg0: i32, %arg1: i32, %arg2: memref<8x512xf32, #tpu.memory_space<vmem>>, %arg3: memref<1x512xf32, #tpu.memory_space<vmem>>, %arg4: memref<8x512xf32, #tpu.memory_space<vmem>>) attributes {dimension_semantics = [#tpu.dimension_semantics<parallel>, #tpu.dimension_semantics<parallel>], iteration_bounds = array<i64: 2, 1>, scalar_prefetch = 0 : i64, scratch_operands = 0 : i64, tpu.core_type = #tpu.core_type<tc>, window_params = [{transform_indices = @transform_0, window_bounds = array<i64: 8, 512>}, {transform_indices = @transform_1, window_bounds = array<i64: 1, 512>}, {transform_indices = @transform_2, window_bounds = array<i64: 8, 512>}]} {
    %c0 = arith.constant 0 : index
    %c0_0 = arith.constant 0 : index
    %0 = vector.load %arg2[%c0, %c0_0] : memref<8x512xf32, #tpu.memory_space<vmem>>, vector<8x512xf32>
    %c0_1 = arith.constant 0 : index
    %c0_2 = arith.constant 0 : index
    %1 = vector.load %arg3[%c0_1, %c0_2] : memref<1x512xf32, #tpu.memory_space<vmem>>, vector<1x512xf32>
    %2 = vector.broadcast %1 : vector<1x512xf32> to vector<8x512xf32>
    %3 = arith.mulf %0, %2 : vector<8x512xf32>
    %c0_3 = arith.constant 0 : index
    %c0_4 = arith.constant 0 : index
    %4 = vector.load %arg4[%c0_3, %c0_4] : memref<8x512xf32, #tpu.memory_space<vmem>>, vector<8x512xf32>
    tpu.vector_store %arg4[%c0_3, %c0_4], %3 {strides = array<i32>} : memref<8x512xf32, #tpu.memory_space<vmem>>, vector<8x512xf32>,
    return
  }
  func.func @transform_0(%arg0: i32, %arg1: i32) -> (i32, i32) {
    %c0_i32 = arith.constant 0 : i32
    return %arg1, %arg0 : i32, i32
  }
  func.func @transform_1(%arg0: i32, %arg1: i32) -> (i32, i32) {
    %c0_i32 = arith.constant 0 : i32
    %c0_i32_0 = arith.constant 0 : i32
    return %c0_i32, %arg0 : i32, i32
  }
  func.func @transform_2(%arg0: i32, %arg1: i32) -> (i32, i32) {
    %c0_i32 = arith.constant 0 : i32
    return %arg1, %arg0 : i32, i32
  }
}

</mosaic_0001>

<bundles_post_ra>
// kernel: tpu_custom_call.1
= control target key start
LH: loop header
LB: loop body
LE: loop exit
PB: predicated region body
PF: predicated region fallthrough
CT: control target
= control target key end

     0   :  { %7 = vsyncpa [#allocation3], 0  ;;  %s826_s0 = inlined_call_operand.hbm [shape: f32[2,1024], index: 0, kind: input, shape index: {}]   ;;  %s827_s1 = inlined_call_operand.hbm [shape: f32[1,1024], index: 1, kind: input, shape index: {}]   ;;  %s828_s2 = inlined_call_operand.hbm [shape: f32[2,1024], index: 2, kind: output, shape index: {}]  }
   0x1   :  { %9 = vsyncpa [#allocation3 + $0x1], 0 }
   0x2   :  { %10 = vsyncpa [#allocation6], 0 }
   0x3   :  { %12 = vsyncpa [#allocation6 + $0x1], 0 }
   0x4   :  { %13 = vsyncpa [#allocation4], 0 }
   0x5   :  { %15 = vsyncpa [#allocation4 + $0x1], 0  ;;  %s678_s9 = smov 0   ;;  %s680_s10 = smov 0  }
   0x6   :  { %s682_s11 = smov 0   ;;  %s684_s12 = smov 0  }
   0x7   :  { %s686_s13 = smov 0   ;;  %s688_s14 = smov 0  }
   0x8 LB: > { %s437_s15 = sadd.s32 4294967295, %s651_s14   ;;  %s438_s16 = sadd.s32 4294967294, %s651_s14   ;;  %s651_s14 = sphi %s688_s14, %s21_s14   ;;  %s647_s13 = sphi %s686_s13, %s839_s13   ;;  %s643_s12 = sphi %s684_s12, %s838_s12   ;;  %s639_s11 = sphi %s682_s11, %s837_s11   ;;  %s635_s10 = sphi %s680_s10, %s836_s10   ;;  %s631_s9 = sphi %s678_s9, %s835_s9  }
   0x9   : > { %s33_s17 = sadd.s32 1, %s647_s13  ;;  %s42_s18 = sadd.s32 1, %s639_s11 }
   0xa   : > { %p35_p0 = scmp.ge.s32.totalorder %s33_s17, 2  ;;  %p49_p1 = scmp.ne.s32.totalorder %s639_s11, %s635_s10 }
   0xb   : > { %p50_p2 = scmp.eq.s32.totalorder %s651_s14, 0  ;;  %p55_p3 = scmp.ne.s32.totalorder %s635_s10, %s631_s9 }
   0xc   : > { %s841_s17 = smov (%p35_p0, %s33_s17), 0  ;;  %p56_p5 = scmp.eq.s32.totalorder %s437_s15, 0 }
   0xd   : > { %p719_p4 = por %p50_p2, %p49_p1  ;;  %s38_s20 = ssub.s32 %s647_s13, %s841_s17 }
   0xe   : > { %p107_p6 = scmp.eq.s32.totalorder %s437_s15, 1  ;;  %p40_p7 = scmp.eq.s32.totalorder %s38_s20, 0 }
   0xf   : > { %p725_p8 = por %p56_p5, %p55_p3  ;;  %p113_p10 = scmp.eq.s32.totalorder %s438_s16, 1 }
  0x10   : > { %p729_p9 = por %p107_p6, %p49_p1  ;;  %p829_p12 = scmp.ge.s32.totalorder %s651_s14, 2 }
  0x11   : > { %s734_s23 = scalar_select %p40_p7, %s639_s11, %s42_s18  }
  0x12   : > { %p736_p11 = por %p113_p10, %p55_p3  ;;  %129 = sbr.rel (%p829_p12) target bundleno = 58 (0x3a), region = 16 }
  0x17   : > { %132 = sbr.rel (!%p719_p4) target bundleno = 43 (0x2b), region = 20  ;;  %s133_s25 = sand.u32 (%p719_p4), 1, %s639_s11  }
  0x18   : > { %s441_s26 = sshll.u32 (%p719_p4), %s133_s25, 5  ;;  %s134_s27 = scalar_lea.sflag (%p719_p4), [#allocation3], %s133_s25 }
  0x19   : > { %s137_s28 = scalar_lea.vmem (%p719_p4), [#allocation2], %s441_s26 }
  0x1c   : > { %145 = vsyncadd %s134_s27, 384  ;;  %s456_s29 = sshll.u32 %s647_s13, 7  ;;  %s152_s30 = sshll.u32 %s137_s28, 4  ;;  %s153_s30 = int_to_ptr.vmem [resolvable:$true] %s152_s30 }
  0x1d   : > { %s150_s5 = scalar_lea.hbm %s826_s0, %s456_s29  ;;  %s533_s6 = scalar_lea.vmem %s153_s30, 128 }
  0x1e   : > { %p534_p13 = scmp.ne.s32.totalorder %s153_s30, %s533_s6  ;;  %s653_s7 = smov [#allocation2]  }
  0x1f   : > { %s535_s8 = sshll.u32 %s653_s7, 4  ;;  %s536_s8 = int_to_ptr.vmem [resolvable:$false] %s535_s8 }
  0x20   : > { %s537_s15 = scalar_lea.vmem %s536_s8, 1024  ;;  %p538_p0 = scmp.lt.s32.totalorder %s153_s30, %s536_s8 }
  0x21   : > { %p539_p1 = scmp.lt.s32.totalorder %s537_s15, %s533_s6 }
  0x23   : > { %p540_p2 = por %p539_p1, %p538_p0 }
  0x25   : > { %p541_p3 = pnand %p540_p2, %p534_p13 }
  0x27   : > { %544 = shalt.err (!%p541_p3)
}
  0x28   : > { %s654_s16 = smov 256   ;;  %s655_s18 = smov 128  }
  0x29   : > { %s656_s20 = smov 8  }
  0x2a   : > { %158 = dma.hbm_to_vmem [thread:$0]  %s150_s5, 128, %s153_s30, %s134_s27, %s654_s16, %s655_s18, %s656_s20  }
  0x2b PF: > { %s162_s25 = sand.u32 1, %s639_s11   ;;  %s457_s26 = sshll.u32 %s647_s13, 6 }
  0x2c   : > { %s444_s28 = sshll.u32 %s162_s25, 2  ;;  %s172_s4 = scalar_lea.hbm %s827_s1, %s457_s26 }
  0x2d   : > { %s166_s7 = scalar_lea.vmem [#allocation5], %s444_s28  ;;  %s163_s8 = scalar_lea.sflag [#allocation6], %s162_s25 }
  0x2e   : > { %s174_s6 = sshll.u32 %s166_s7, 4  ;;  %s657_s27 = smov [#allocation5]   ;;  %s175_s6 = int_to_ptr.vmem [resolvable:$true] %s174_s6 }
  0x2f   : > { %s557_s15 = scalar_lea.vmem %s175_s6, 64  ;;  %s561_s30 = sshll.u32 %s657_s27, 4  ;;  %s562_s30 = int_to_ptr.vmem [resolvable:$false] %s561_s30 }
  0x30   : > { %p558_p5 = scmp.ne.s32.totalorder %s175_s6, %s557_s15  ;;  %s563_s5 = scalar_lea.vmem %s562_s30, 128 }
  0x31   : > { %p564_p10 = scmp.lt.s32.totalorder %s175_s6, %s562_s30  ;;  %p565_p13 = scmp.lt.s32.totalorder %s563_s5, %s557_s15 }
  0x32   : > { %p559_p6 = pnand %p558_p5, %p719_p4 }
  0x33   : > { %p566_p0 = por %p565_p13, %p564_p10 }
  0x34   : > { %p560_p7 = pneg %p559_p6 }
  0x36   : > { %p567_p1 = pnand %p566_p0, %p560_p7 }
  0x38   : > { %570 = shalt.err (!%p567_p1)
}
  0x39   : > { %459 = dma.hbm_to_vmem [thread:$0]  (%p719_p4), %s172_s4, 64, %s175_s6, %s163_s8  }
  0x3a PF: > { %p447_p2 = scmp.ge.s32.totalorder %s651_s14, 1  ;;  %p179_p3 = scmp.lt.s32.totalorder %s651_s14, 3 }
  0x3c   : > { %p180_p12 = pnand %p447_p2, %p179_p3 }
  0x3d   : > { %s762_s16 = sand.u32 (!%p180_p12), 1, %s635_s10  }
  0x3e   : > { %183 = sbr.rel (%p180_p12) target bundleno = 113 (0x71), region = 28  ;;  %s448_s18 = sshll.u32 (!%p180_p12), %s762_s16, 5 }
  0x3f   : > { %s186_s20 = scalar_lea.sflag (!%p180_p12), [#allocation3], %s762_s16  ;;  %s768_s25 = scalar_lea.vmem (!%p180_p12), [#allocation2], %s448_s18 }
  0x43   : > { %618 = dma.done.wait (%p725_p8), %s186_s20, 512  }
  0x44   : > { %620 = vsyncadd (%p725_p8), %s186_s20, 4294966784  ;;  %s449_s19 = sshll.u32 %s762_s16, 2  ;;  %s195_s26 = scalar_lea.sflag [#allocation6], %s762_s16 }
  0x45   : > { %s198_s28 = scalar_lea.vmem [#allocation5], %s449_s19 }
  0x46   : > { %622 = dma.done.wait (%p725_p8), %s195_s26, 64  }
  0x47   : > { %624 = vsyncadd (%p725_p8), %s195_s26, 4294967232  ;;  %v241_v0 = vlaneseq  ;;  %v658_v1 = vmov 1983009808   ;;  %v239_v9 = vld [vmem:[%s198_s28] sm:$0xf]  ;;  %v236_v24 = vld [vmem:[%s768_s25 + $0x8] sm:$0xff] }
  0x48   : > { %v262_v2 = vunpack.c.l.s4 %v658_v1  ;;  %v235_v19 = vld [vmem:[%s768_s25] sm:$0xff]  ;;  %v237_v25 = vld [vmem:[%s768_s25 + $0x10] sm:$0xff]  ;;  %v238_v26 = vld [vmem:[%s768_s25 + $0x18] sm:$0xff]  ;;  %s223_s21 = scalar_lea.vmem [#allocation7], %s448_s18  ;;  %s306_s29 = scalar_lea.sflag [#allocation4], %s762_s16 }
  0x49   : > { %v242_v3 = vshrl.u32 %v241_v0, 7 }
  0x4a   : > { %v263_v4 = vunpack.c.0.s8 %v262_v2 }
  0x4b   : > { %v243_v5 = vsub.s32 0, %v242_v3  ;;  %v247_v6 = vsub.s32 1, %v242_v3  ;;  %v251_v7 = vsub.s32 2, %v242_v3  ;;  %v255_v8 = vsub.s32 3, %v242_v3 }
  0x4c   : > { %v266_v10 = vsub.s32 %v263_v4, %v242_v3 }
  0x4d   : > { %v244_v11 = vrot.slane %v239_v9, %v243_v5  ;;  %v248_v12 = vrot.slane %v239_v9, %v247_v6  ;;  %v252_v13 = vrot.slane %v239_v9, %v251_v7  ;;  %v256_v14 = vrot.slane %v239_v9, %v255_v8 }
  0x4f   : > { %v257_v15 = vcombine.low %v244_v11, %v248_v12  ;;  %v259_v16 = vcombine.low %v252_v13, %v256_v14  ;;  %v258_v17 = vcombine.high %v244_v11, %v248_v12  ;;  %v260_v18 = vcombine.high %v252_v13, %v256_v14 }
  0x51   : > { %v267_v20 = vrot.slane %v257_v15, %v266_v10  ;;  %v281_v21 = vrot.slane %v259_v16, %v266_v10  ;;  %v274_v22 = vrot.slane %v258_v17, %v266_v10  ;;  %v288_v23 = vrot.slane %v260_v18, %v266_v10 }
  0x53   : > { %v289_v27 = vcombine.low %v267_v20, %v281_v21  ;;  %v290_v28 = vcombine.high %v267_v20, %v281_v21  ;;  %v291_v29 = vcombine.low %v274_v22, %v288_v23  ;;  %v292_v30 = vcombine.high %v274_v22, %v288_v23 }
  0x54   : > { %312 = sbr.rel (!%p729_p9) target bundleno = 113 (0x71), region = 40 }
  0x55   : > { %v297_v31 = vmul.f32 %v289_v27, %v235_v19  ;;  %v298_v32 = vmul.f32 %v290_v28, %v236_v24  ;;  %v299_v33 = vmul.f32 %v291_v29, %v237_v25  ;;  %v300_v34 = vmul.f32 %v292_v30, %v238_v26 }
  0x57   : > { %301 = vst [vmem:[%s223_s21] sm:$0xff] %v297_v31  ;;  %302 = vst [vmem:[%s223_s21 + $0x8] sm:$0xff] %v298_v32 }
  0x58   : > { %303 = vst [vmem:[%s223_s21 + $0x10] sm:$0xff] %v299_v33  ;;  %304 = vst [vmem:[%s223_s21 + $0x18] sm:$0xff] %v300_v34 }
  0x59   : > { %320 = vsyncadd %s306_s29, 384  ;;  %s458_s3 = sshll.u32 %s643_s12, 7  ;;  %s327_s4 = sshll.u32 %s223_s21, 4  ;;  %s328_s4 = int_to_ptr.vmem [resolvable:$true] %s327_s4 }
  0x5a   : > { %s325_s8 = scalar_lea.hbm %s828_s2, %s458_s3  ;;  %s571_s15 = scalar_lea.vmem %s328_s4, 128 }
  0x5b   : > { %p572_p4 = scmp.ne.s32.totalorder %s328_s4, %s571_s15  ;;  %s659_s27 = smov [#allocation7]  }
  0x5c   : > { %s573_s30 = sshll.u32 %s659_s27, 4  ;;  %s574_s30 = int_to_ptr.vmem [resolvable:$false] %s573_s30 }
  0x5d   : > { %s575_s5 = scalar_lea.vmem %s574_s30, 1024  ;;  %p576_p8 = scmp.lt.s32.totalorder %s328_s4, %s574_s30 }
  0x5e   : > { %p577_p12 = scmp.lt.s32.totalorder %s575_s5, %s571_s15 }
  0x60   : > { %p578_p9 = por %p577_p12, %p576_p8 }
  0x62   : > { %p579_p5 = pnand %p578_p9, %p572_p4 }
  0x64   : > { %582 = shalt.err (!%p579_p5)
}
  0x65   : > { %s583_s22 = scalar_lea.hbm %s325_s8, 128  ;;  %s585_s20 = scalar_lea.hbm %s828_s2, 256 }
  0x66   : > { %p584_p6 = scmp.ne.s32.totalorder %s325_s8, %s583_s22  ;;  %p586_p7 = scmp.lt.s32.totalorder %s325_s8, %s828_s2 }
  0x67   : > { %p587_p10 = scmp.lt.s32.totalorder %s585_s20, %s583_s22 }
  0x69   : > { %p588_p13 = por %p587_p10, %p586_p7 }
  0x6b   : > { %p589_p0 = pnand %p588_p13, %p584_p6 }
  0x6d   : > { %592 = shalt.err (!%p589_p0)
}
  0x6e   : > { %s660_s26 = smov 128   ;;  %s661_s28 = smov 256  }
  0x6f   : > { %s662_s21 = smov 8  }
  0x70   : > { %333 = dma.vmem_to_hbm [thread:$0]  %s328_s4, 128, %s325_s8, %s306_s29, %s660_s26, %s661_s28, %s662_s21  }
  0x71 PF: > { %s342_s3 = sand.u32 1, %s631_s9   ;;  %p834_p1 = scmp.ge.s32.totalorder %s651_s14, 2 }
  0x72   : > { %s343_s7 = scalar_lea.sflag [#allocation4], %s342_s3 }
  0x73   : > { %p464_p2 = pnand %p834_p1, %p736_p11 }
  0x75   : > { %p465_p3 = pneg %p464_p2 }
  0x77   : > { %626 = dma.done.wait (%p465_p3), %s343_s7, 512  }
  0x78   : > { %628 = vsyncadd (%p465_p3), %s343_s7, 4294966784  ;;  %s21_s14 = sadd.s32 1, %s651_s14   ;;  %s835_s9 = smov %s635_s10 }
  0x79   : > { %p18_p4 = scmp.ge.s32.totalorder %s21_s14, 4   ;;  %s836_s10 = smov %s639_s11 }
  0x7a   : > { %s837_s11 = smov %s734_s23  ;;  %s838_s12 = smov %s647_s13 }
  0x7b   : > { %s839_s13 = smov %s841_s17  ;;  %20 = sbr.rel (!%p18_p4) target bundleno = 8 (0x8), region = 86 }
  0x80   :  { %348 = vsyncpa [#allocation3], 1 }
  0x81   :  { %350 = vsyncpa [#allocation3 + $0x1], 1 }
  0x82   :  { %351 = vsyncpa [#allocation6], 1 }
  0x83   :  { %353 = vsyncpa [#allocation6 + $0x1], 1 }
  0x84   :  { %354 = vsyncpa [#allocation4], 1 }
  0x85   :  { %356 = vsyncpa [#allocation4 + $0x1], 1 }

</bundles_post_ra>
